<compile_context>
chip_gen: v7x
topology: tpu7x:2x2x1
jax: 0.10.0
libtpu: 0.0.40
codegen_flags: <defaults>
</compile_context>

<pallas_src>
import jax
import jax.numpy as jnp
from jax import lax
from jax.experimental import pallas as pl
from jax.experimental.pallas import tpu as pltpu


# ------------------------------ fused decode kernel ------------------------------
def _decode_kernel(codes_ref, cbf_ref, w1_ref, b1_ref, wt_ref, bt_ref,
                   w2_ref, b2_ref, out_ref):
    BG, T, K = codes_ref.shape                 # batch group, frames, quantizers
    M = BG * T                                 # rows fed to every matmul
    V = cbf_ref.shape[0] // K
    H = w1_ref.shape[1]
    H2 = wt_ref.shape[1] // 2
    f32 = jnp.float32
    bf16 = jnp.bfloat16

    def elu(x):
        # Clamp the exp argument so the untaken branch never produces inf.
        # TODO(synk): switch to jnp.expm1 once its Mosaic lowering is confirmed.
        return jnp.where(x > 0, x, jnp.exp(jnp.minimum(x, 0.0)) - 1.0)

    # Per-batch-segment row index (each batch element owns T consecutive rows of M).
    rows = lax.broadcasted_iota(jnp.int32, (M, 1), 0)
    if (T & (T - 1)) == 0:
        row_t = jnp.bitwise_and(rows, T - 1)
    else:
        row_t = rows % T

    def shift(x, direction):
        """direction=+1: out[r]=x[r-1] (0 at segment start); -1: out[r]=x[r+1] (0 at end)."""
        amt = 1 if direction > 0 else M - 1            # avoid negative rotate amounts
        rolled = pltpu.roll(x, amt, 0)                 # XLU sublane rotate (free vs VPU/MXU)
        keep = (row_t != 0) if direction > 0 else (row_t != T - 1)
        return jnp.where(keep, rolled, 0.0)

    # ---- 1) RVQ decode: one (M, K*V) bf16 one-hot @ (K*V, D) codebook matmul --------
    codes = codes_ref[...].reshape(M, K)                               # int32, view
    iota_v = lax.broadcasted_iota(jnp.int32, (M, V), 1)
    onehot = jnp.concatenate(
        [(codes[:, k:k + 1] == iota_v).astype(bf16) for k in range(K)], axis=-1)
    latent = jnp.dot(onehot, cbf_ref[...], preferred_element_type=f32)  # (M, D) f32

    # ---- 2) Conv1d(D->H, k=3, pad=1) + ELU: taps stacked on the contraction dim -----
    xs = jnp.concatenate([shift(latent, +1), latent, shift(latent, -1)], axis=-1)  # (M,3D)
    h = elu(jnp.dot(xs.astype(bf16), w1_ref[...], preferred_element_type=f32)
            + b1_ref[...])                                              # (M, H) f32

    # ---- 3) ConvTranspose1d(H->H2, k=4, s=2, p=1) + ELU, both phases in one matmul --
    #   y_even[m] = h[m]@Wt1 + h[m-1]@Wt3 ; y_odd[m] = h[m]@Wt2 + h[m+1]@Wt0
    xt = jnp.concatenate([h, shift(h, +1), shift(h, -1)], axis=-1)      # (M, 3H)
    y = elu(jnp.dot(xt.astype(bf16), wt_ref[...], preferred_element_type=f32)
            + bt_ref[...])                                              # (M, 2*H2)
    y_even = y[:, :H2]
    y_odd = y[:, H2:]

    # ---- 4) Conv1d(H2->1, k=3, pad=1), polyphase; RHS zero-padded to 128 columns ----
    #   audio[2m]   = y_odd[m-1]@c0 + y_even[m]@c1 + y_odd[m]@c2
    #   audio[2m+1] = y_even[m]@c0  + y_odd[m]@c1  + y_even[m+1]@c2
    z = jnp.concatenate([shift(y_odd, +1), y_even, y_odd, shift(y_even, -1)], axis=-1)
    out_ref[...] = (jnp.dot(z.astype(bf16), w2_ref[...], preferred_element_type=f32)
                    + b2_ref[...])                                      # (M, 128) unmasked vst


# --------------------------------- decode wrapper --------------------------------
def compression_decode(codes, prep, *, batch_group=None):
    """codes: [B, K, T] int32 -> audio [B, 1, 2T] f32 (NCT, like PyTorch)."""
    B, K, T = codes.shape
    if batch_group is None:
        batch_group = B          # fold the whole batch into M (best on single-TC v5e/v6e);
    assert B % batch_group == 0  # set batch_group=B//2 on v7x for a 2-way parallel grid.
    G = B // batch_group
    M = batch_group * T

    cbf = prep["cbf"]
    KV, D = cbf.shape
    V = KV // K
    H = prep["w1f"].shape[1]
    H2 = prep["wteo"].shape[1] // 2

    # Time on sublanes, quantizer index on lanes; tiny one-time XLA transpose.
    codes_btk = jnp.transpose(codes, (0, 2, 1))                         # (B, T, K)

    inputs = (codes_btk, cbf, prep["w1f"], prep["b1f"], prep["wteo"], prep["bteo"],
              prep["w2m"], prep["b2m"])
    flops = 2 * B * T * (K * V * D + 3 * D * H + 3 * H * 2 * H2 + 4 * H2 * 128)
    transcendentals = B * T * (H + 2 * H2)
    bytes_accessed = (sum(int(x.size) * x.dtype.itemsize for x in inputs)
                      + B * T * 128 * 4)

    out = pl.pallas_call(
        _decode_kernel,
        out_shape=jax.ShapeDtypeStruct((B * T, 128), jnp.float32),
        grid_spec=pltpu.PrefetchScalarGridSpec(
            num_scalar_prefetch=0,
            grid=(G,),
            in_specs=[
                pl.BlockSpec((batch_group, T, K), lambda g: (g, 0, 0)),   # codes (B,T,K)
                # Grid-invariant weights (constant index_map -> DMA'd once).
                # TODO(synk): pipeline_mode=pl.Buffered(1) at production codebook sizes.
                pl.BlockSpec((KV, D), lambda g: (0, 0)),                  # codebooks bf16
                pl.BlockSpec((3 * D, H), lambda g: (0, 0)),               # conv1 taps bf16
                pl.BlockSpec((1, H), lambda g: (0, 0)),                   # conv1 bias f32
                pl.BlockSpec((3 * H, 2 * H2), lambda g: (0, 0)),          # convT polyphase bf16
                pl.BlockSpec((1, 2 * H2), lambda g: (0, 0)),              # convT bias f32
                pl.BlockSpec((4 * H2, 128), lambda g: (0, 0)),            # final conv, 128-pad
                pl.BlockSpec((1, 128), lambda g: (0, 0)),                 # final bias, 128-pad
            ],
            out_specs=pl.BlockSpec((M, 128), lambda g: (g, 0)),
        ),
        compiler_params=pltpu.CompilerParams(
            dimension_semantics=("parallel",),
            vmem_limit_bytes=32 * 1024 * 1024),
        cost_estimate=pl.CostEstimate(
            flops=flops, transcendentals=transcendentals, bytes_accessed=bytes_accessed),
    )(*inputs)

    # Columns 0/1 of the full-width slab are the even/odd phases; row-major interleave.
    audio2 = out[:, :2].reshape(B, T, 2)
    return audio2.reshape(B, 1, 2 * T)


# ------------------------------- parameter handling ------------------------------
def init_params(key, K, V, D, H, H2):
    """PyTorch-layout parameters of the tiny codec decoder."""
    ks = jax.random.split(key, 7)
    s = 0.1
    return {
        "codebooks": s * jax.random.normal(ks[0], (K, V, D), jnp.float32),
        "w1": s * jax.random.normal(ks[1], (H, D, 3), jnp.float32),   # Conv1d: [out, in, k]
        "b1": s * jax.random.normal(ks[2], (H,), jnp.float32),
        "wt": s * jax.random.normal(ks[3], (H, H2, 4), jnp.float32),  # ConvT1d: [in, out, k]
        "bt": s * jax.random.normal(ks[4], (H2,), jnp.float32),
        "w2": s * jax.random.normal(ks[5], (1, H2, 3), jnp.float32),  # Conv1d: [out, in, k]
        "b2": s * jax.random.normal(ks[6], (1,), jnp.float32),
    }


def prepare_params(params):
    """One-time weight packing (hoisted out of the per-forward decode path)."""
    cb = params["codebooks"]
    K, V, D = cb.shape
    w1 = params["w1"]                       # (H, D, 3)
    H = w1.shape[0]
    wt = params["wt"]                       # (H, H2, 4)
    H2 = wt.shape[1]
    w2 = params["w2"]                       # (1, H2, 3)
    bf16 = jnp.bfloat16

    # RVQ: flatten codebooks so one (M, K*V) one-hot matmul reconstructs the latent.
    cbf = cb.reshape(K * V, D).astype(bf16)

    # Conv1: per-tap (D, H) matrices stacked along the contraction dim -> (3D, H).
    w1f = jnp.transpose(w1, (2, 1, 0)).reshape(3 * D, H).astype(bf16)
    b1f = params["b1"].reshape(1, H).astype(jnp.float32)

    # ConvT polyphase weights: [h | h_prev | h_next] @ wteo = [y_even | y_odd].
    Wt = [wt[:, :, k] for k in range(4)]
    zHH2 = jnp.zeros((H, H2), jnp.float32)
    wteo = jnp.concatenate([
        jnp.concatenate([Wt[1], Wt[2]], axis=1),    # multiplies h[m]
        jnp.concatenate([Wt[3], zHH2], axis=1),     # multiplies h[m-1]
        jnp.concatenate([zHH2, Wt[0]], axis=1),     # multiplies h[m+1]
    ], axis=0).astype(bf16)                         # (3H, 2*H2)
    bteo = jnp.concatenate([params["bt"], params["bt"]]).reshape(1, 2 * H2).astype(jnp.float32)

    # Final conv polyphase, zero-padded to 128 output columns (lane-dense MXU + store):
    #   column 0 = even phase, column 1 = odd phase, columns 2..127 = 0.
    c = [w2[0, :, j] for j in range(3)]             # each (H2,)
    zc = jnp.zeros((H2,), jnp.float32)
    col_even = jnp.concatenate([c[0], c[1], c[2], zc])
    col_odd = jnp.concatenate([zc, c[0], c[1], c[2]])
    w2m = jnp.zeros((4 * H2, 128), jnp.float32)
    w2m = w2m.at[:, 0].set(col_even).at[:, 1].set(col_odd).astype(bf16)
    b2m = jnp.zeros((1, 128), jnp.float32)
    b2m = b2m.at[0, 0].set(params["b2"][0]).at[0, 1].set(params["b2"][0])

    return {"cbf": cbf, "w1f": w1f, "b1f": b1f, "wteo": wteo, "bteo": bteo,
            "w2m": w2m, "b2m": b2m}


# ------------------------------ pure-JAX reference -------------------------------
def _ref_decode(codes, params):
    cb = params["codebooks"]
    K = cb.shape[0]
    B, _, T = codes.shape
    elu = lambda x: jnp.where(x > 0, x, jnp.exp(x) - 1.0)

    latent = sum(cb[k][codes[:, k, :]] for k in range(K))            # (B, T, D)

    xp = jnp.pad(latent, ((0, 0), (1, 1), (0, 0)))
    w1, b1 = params["w1"], params["b1"]
    h = sum(jnp.einsum("btd,hd->bth", xp[:, j:j + T, :], w1[:, :, j],
                       precision="highest") for j in range(3)) + b1
    h = elu(h)                                                        # (B, T, H)

    wt, bt = params["wt"], params["bt"]
    H2 = wt.shape[1]
    y = jnp.zeros((B, 2 * T + 2, H2), jnp.float32)                    # index o+1, o in [-1, 2T]
    for i in range(T):
        for k4 in range(4):
            o = 2 * i - 1 + k4
            y = y.at[:, o + 1, :].add(
                jnp.einsum("bh,hc->bc", h[:, i, :], wt[:, :, k4], precision="highest"))
    y = elu(y[:, 1:2 * T + 1, :] + bt)                                # (B, 2T, H2)

    w2, b2 = params["w2"], params["b2"]
    yp = jnp.pad(y, ((0, 0), (1, 1), (0, 0)))
    audio = sum(jnp.einsum("btc,c->bt", yp[:, j:j + 2 * T, :], w2[0, :, j],
                           precision="highest") for j in range(3)) + b2
    return audio[:, None, :]                                          # (B, 1, 2T)


if __name__ == "__main__":
    B, K, T = 2, 4, 8          # batch, num quantizers, code frames
    V, D = 64, 32              # codebook size, embedding dim
    H, H2 = 32, 16             # decoder hidden widths

    key = jax.random.PRNGKey(0)
    k_codes, k_params = jax.random.split(key)
    codes = jax.random.randint(k_codes, (B, K, T), 0, V, dtype=jnp.int32)
    params = init_params(k_params, K, V, D, H, H2)
    prep = prepare_params(params)            # one-time weight packing (incl. bf16 cast)

    decode = jax.jit(compression_decode)
    audio = decode(codes, prep)
    audio = jax.block_until_ready(audio)

    assert audio.shape == (B, 1, 2 * T), audio.shape
    assert bool(jnp.isfinite(audio).all())

    ref = _ref_decode(codes, params)
    err = float(jnp.abs(audio - ref).max())
    # Tolerance reflects bf16 MXU operands with f32 accumulation vs. an f32 reference.
    assert jnp.allclose(audio, ref, atol=1e-2, rtol=5e-2), err

    print("KERNEL_OK")
</pallas_src>

<mosaic_0001>
module attributes {stable_mosaic.version = 11 : i64} {
  func.func @_decode_kernel(%arg0: i32, %arg1: memref<2x8x4xi32, #tpu.memory_space<vmem>>, %arg2: memref<256x32xbf16, #tpu.memory_space<vmem>>, %arg3: memref<96x32xbf16, #tpu.memory_space<vmem>>, %arg4: memref<1x32xf32, #tpu.memory_space<vmem>>, %arg5: memref<96x32xbf16, #tpu.memory_space<vmem>>, %arg6: memref<1x32xf32, #tpu.memory_space<vmem>>, %arg7: memref<64x128xbf16, #tpu.memory_space<vmem>>, %arg8: memref<1x128xf32, #tpu.memory_space<vmem>>, %arg9: memref<16x128xf32, #tpu.memory_space<vmem>>) attributes {dimension_semantics = [#tpu.dimension_semantics<parallel>], iteration_bounds = array<i64: 1>, scalar_prefetch = 0 : i64, scratch_operands = 0 : i64, tpu.core_type = #tpu.core_type<tc>, window_params = [{transform_indices = @transform_0, window_bounds = array<i64: 2, 8, 4>}, {pipeline_mode = #tpu.pipeline_mode<synchronous>, transform_indices = @transform_1, window_bounds = array<i64: 256, 32>}, {pipeline_mode = #tpu.pipeline_mode<synchronous>, transform_indices = @transform_2, window_bounds = array<i64: 96, 32>}, {pipeline_mode = #tpu.pipeline_mode<synchronous>, transform_indices = @transform_3, window_bounds = array<i64: 1, 32>}, {pipeline_mode = #tpu.pipeline_mode<synchronous>, transform_indices = @transform_4, window_bounds = array<i64: 96, 32>}, {pipeline_mode = #tpu.pipeline_mode<synchronous>, transform_indices = @transform_5, window_bounds = array<i64: 1, 32>}, {pipeline_mode = #tpu.pipeline_mode<synchronous>, transform_indices = @transform_6, window_bounds = array<i64: 64, 128>}, {pipeline_mode = #tpu.pipeline_mode<synchronous>, transform_indices = @transform_7, window_bounds = array<i64: 1, 128>}, {transform_indices = @transform_8, window_bounds = array<i64: 16, 128>}]} {
    %0 = tpu.iota {dimensions = array<i32: 0>} : vector<16x1xi32>
    %c7_i32 = arith.constant 7 : i32
    %1 = vector.broadcast %c7_i32 : i32 to vector<16x1xi32>
    %2 = arith.andi %0, %1 : vector<16x1xi32>
    %c0 = arith.constant 0 : index
    %c0_0 = arith.constant 0 : index
    %c0_1 = arith.constant 0 : index
    %3 = vector.load %arg1[%c0, %c0_0, %c0_1] : memref<2x8x4xi32, #tpu.memory_space<vmem>>, vector<2x8x4xi32>
    %4 = vector.shape_cast %3 : vector<2x8x4xi32> to vector<16x4xi32>
    %5 = tpu.iota {dimensions = array<i32: 1>} : vector<16x64xi32>
    %6 = vector.extract_strided_slice %4 {offsets = [0, 0], sizes = [16, 1], strides = [1, 1]} : vector<16x4xi32> to vector<16x1xi32>
    %7 = vector.broadcast %6 : vector<16x1xi32> to vector<16x64xi32>
    %8 = arith.cmpi eq, %7, %5 : vector<16x64xi32>
    %9 = arith.extui %8 : vector<16x64xi1> to vector<16x64xi32>
    %10 = arith.sitofp %9 : vector<16x64xi32> to vector<16x64xf32>
    %11 = arith.truncf %10 : vector<16x64xf32> to vector<16x64xbf16>
    %12 = vector.extract_strided_slice %4 {offsets = [0, 1], sizes = [16, 1], strides = [1, 1]} : vector<16x4xi32> to vector<16x1xi32>
    %13 = vector.broadcast %12 : vector<16x1xi32> to vector<16x64xi32>
    %14 = arith.cmpi eq, %13, %5 : vector<16x64xi32>
    %15 = arith.extui %14 : vector<16x64xi1> to vector<16x64xi32>
    %16 = arith.sitofp %15 : vector<16x64xi32> to vector<16x64xf32>
    %17 = arith.truncf %16 : vector<16x64xf32> to vector<16x64xbf16>
    %18 = vector.extract_strided_slice %4 {offsets = [0, 2], sizes = [16, 1], strides = [1, 1]} : vector<16x4xi32> to vector<16x1xi32>
    %19 = vector.broadcast %18 : vector<16x1xi32> to vector<16x64xi32>
    %20 = arith.cmpi eq, %19, %5 : vector<16x64xi32>
    %21 = arith.extui %20 : vector<16x64xi1> to vector<16x64xi32>
    %22 = arith.sitofp %21 : vector<16x64xi32> to vector<16x64xf32>
    %23 = arith.truncf %22 : vector<16x64xf32> to vector<16x64xbf16>
    %24 = vector.extract_strided_slice %4 {offsets = [0, 3], sizes = [16, 1], strides = [1, 1]} : vector<16x4xi32> to vector<16x1xi32>
    %25 = vector.broadcast %24 : vector<16x1xi32> to vector<16x64xi32>
    %26 = arith.cmpi eq, %25, %5 : vector<16x64xi32>
    %27 = arith.extui %26 : vector<16x64xi1> to vector<16x64xi32>
    %28 = arith.sitofp %27 : vector<16x64xi32> to vector<16x64xf32>
    %29 = arith.truncf %28 : vector<16x64xf32> to vector<16x64xbf16>
    %30 = tpu.concatenate %11, %17, %23, %29 in 1 : vector<16x64xbf16>, vector<16x64xbf16>, vector<16x64xbf16>, vector<16x64xbf16> -> vector<16x256xbf16>
    %c0_2 = arith.constant 0 : index
    %c0_3 = arith.constant 0 : index
    %31 = vector.load %arg2[%c0_2, %c0_3] : memref<256x32xbf16, #tpu.memory_space<vmem>>, vector<256x32xbf16>
    %cst = arith.constant dense<0.000000e+00> : vector<16x32xf32>
    %32 = tpu.matmul %30, %31, %cst {dimension_numbers = #tpu.dot_dimension_numbers<[1], [0], [0], [1], [0, 0, 1, 1], [], []>} : vector<16x256xbf16>, vector<256x32xbf16>, vector<16x32xf32> -> vector<16x32xf32>
    %c1_i32 = arith.constant 1 : i32
    %33 = tpu.dynamic_rotate %32 by %c1_i32 dim 0 : vector<16x32xf32>, i32 -> vector<16x32xf32>
    %c0_i32 = arith.constant 0 : i32
    %34 = vector.broadcast %c0_i32 : i32 to vector<16x1xi32>
    %35 = arith.cmpi ne, %2, %34 : vector<16x1xi32>
    %cst_4 = arith.constant 0.000000e+00 : f32
    %36 = vector.shape_cast %35 : vector<16x1xi1> to vector<16x1xi1>
    %37 = vector.broadcast %36 : vector<16x1xi1> to vector<16x32xi1>
    %38 = vector.broadcast %cst_4 : f32 to vector<16x32xf32>
    %39 = arith.select %37, %33, %38 : vector<16x32xi1>, vector<16x32xf32>
    %c15_i32 = arith.constant 15 : i32
    %40 = tpu.dynamic_rotate %32 by %c15_i32 dim 0 : vector<16x32xf32>, i32 -> vector<16x32xf32>
    %c7_i32_5 = arith.constant 7 : i32
    %41 = vector.broadcast %c7_i32_5 : i32 to vector<16x1xi32>
    %42 = arith.cmpi ne, %2, %41 : vector<16x1xi32>
    %cst_6 = arith.constant 0.000000e+00 : f32
    %43 = vector.shape_cast %42 : vector<16x1xi1> to vector<16x1xi1>
    %44 = vector.broadcast %43 : vector<16x1xi1> to vector<16x32xi1>
    %45 = vector.broadcast %cst_6 : f32 to vector<16x32xf32>
    %46 = arith.select %44, %40, %45 : vector<16x32xi1>, vector<16x32xf32>
    %47 = tpu.concatenate %39, %32, %46 in 1 : vector<16x32xf32>, vector<16x32xf32>, vector<16x32xf32> -> vector<16x96xf32>
    %48 = arith.truncf %47 : vector<16x96xf32> to vector<16x96xbf16>
    %c0_7 = arith.constant 0 : index
    %c0_8 = arith.constant 0 : index
    %49 = vector.load %arg3[%c0_7, %c0_8] : memref<96x32xbf16, #tpu.memory_space<vmem>>, vector<96x32xbf16>
    %cst_9 = arith.constant dense<0.000000e+00> : vector<16x32xf32>
    %50 = tpu.matmul %48, %49, %cst_9 {dimension_numbers = #tpu.dot_dimension_numbers<[1], [0], [0], [1], [0, 0, 1, 1], [], []>} : vector<16x96xbf16>, vector<96x32xbf16>, vector<16x32xf32> -> vector<16x32xf32>
    %c0_10 = arith.constant 0 : index
    %c0_11 = arith.constant 0 : index
    %51 = vector.load %arg4[%c0_10, %c0_11] : memref<1x32xf32, #tpu.memory_space<vmem>>, vector<1x32xf32>
    %52 = vector.broadcast %51 : vector<1x32xf32> to vector<16x32xf32>
    %53 = arith.addf %50, %52 : vector<16x32xf32>
    %cst_12 = arith.constant 0.000000e+00 : f32
    %54 = vector.broadcast %cst_12 : f32 to vector<16x32xf32>
    %55 = arith.cmpf ogt, %53, %54 : vector<16x32xf32>
    %cst_13 = arith.constant 0.000000e+00 : f32
    %56 = vector.broadcast %cst_13 : f32 to vector<16x32xf32>
    %57 = arith.minimumf %53, %56 : vector<16x32xf32>
    %58 = math.exp %57 : vector<16x32xf32>
    %cst_14 = arith.constant 1.000000e+00 : f32
    %59 = vector.broadcast %cst_14 : f32 to vector<16x32xf32>
    %60 = arith.subf %58, %59 : vector<16x32xf32>
    %61 = arith.select %55, %53, %60 : vector<16x32xi1>, vector<16x32xf32>
    %c1_i32_15 = arith.constant 1 : i32
    %62 = tpu.dynamic_rotate %61 by %c1_i32_15 dim 0 : vector<16x32xf32>, i32 -> vector<16x32xf32>
    %c0_i32_16 = arith.constant 0 : i32
    %63 = vector.broadcast %c0_i32_16 : i32 to vector<16x1xi32>
    %64 = arith.cmpi ne, %2, %63 : vector<16x1xi32>
    %cst_17 = arith.constant 0.000000e+00 : f32
    %65 = vector.shape_cast %64 : vector<16x1xi1> to vector<16x1xi1>
    %66 = vector.broadcast %65 : vector<16x1xi1> to vector<16x32xi1>
    %67 = vector.broadcast %cst_17 : f32 to vector<16x32xf32>
    %68 = arith.select %66, %62, %67 : vector<16x32xi1>, vector<16x32xf32>
    %c15_i32_18 = arith.constant 15 : i32
    %69 = tpu.dynamic_rotate %61 by %c15_i32_18 dim 0 : vector<16x32xf32>, i32 -> vector<16x32xf32>
    %c7_i32_19 = arith.constant 7 : i32
    %70 = vector.broadcast %c7_i32_19 : i32 to vector<16x1xi32>
    %71 = arith.cmpi ne, %2, %70 : vector<16x1xi32>
    %cst_20 = arith.constant 0.000000e+00 : f32
    %72 = vector.shape_cast %71 : vector<16x1xi1> to vector<16x1xi1>
    %73 = vector.broadcast %72 : vector<16x1xi1> to vector<16x32xi1>
    %74 = vector.broadcast %cst_20 : f32 to vector<16x32xf32>
    %75 = arith.select %73, %69, %74 : vector<16x32xi1>, vector<16x32xf32>
    %76 = tpu.concatenate %61, %68, %75 in 1 : vector<16x32xf32>, vector<16x32xf32>, vector<16x32xf32> -> vector<16x96xf32>
    %77 = arith.truncf %76 : vector<16x96xf32> to vector<16x96xbf16>
    %c0_21 = arith.constant 0 : index
    %c0_22 = arith.constant 0 : index
    %78 = vector.load %arg5[%c0_21, %c0_22] : memref<96x32xbf16, #tpu.memory_space<vmem>>, vector<96x32xbf16>
    %cst_23 = arith.constant dense<0.000000e+00> : vector<16x32xf32>
    %79 = tpu.matmul %77, %78, %cst_23 {dimension_numbers = #tpu.dot_dimension_numbers<[1], [0], [0], [1], [0, 0, 1, 1], [], []>} : vector<16x96xbf16>, vector<96x32xbf16>, vector<16x32xf32> -> vector<16x32xf32>
    %c0_24 = arith.constant 0 : index
    %c0_25 = arith.constant 0 : index
    %80 = vector.load %arg6[%c0_24, %c0_25] : memref<1x32xf32, #tpu.memory_space<vmem>>, vector<1x32xf32>
    %81 = vector.broadcast %80 : vector<1x32xf32> to vector<16x32xf32>
    %82 = arith.addf %79, %81 : vector<16x32xf32>
    %cst_26 = arith.constant 0.000000e+00 : f32
    %83 = vector.broadcast %cst_26 : f32 to vector<16x32xf32>
    %84 = arith.cmpf ogt, %82, %83 : vector<16x32xf32>
    %cst_27 = arith.constant 0.000000e+00 : f32
    %85 = vector.broadcast %cst_27 : f32 to vector<16x32xf32>
    %86 = arith.minimumf %82, %85 : vector<16x32xf32>
    %87 = math.exp %86 : vector<16x32xf32>
    %cst_28 = arith.constant 1.000000e+00 : f32
    %88 = vector.broadcast %cst_28 : f32 to vector<16x32xf32>
    %89 = arith.subf %87, %88 : vector<16x32xf32>
    %90 = arith.select %84, %82, %89 : vector<16x32xi1>, vector<16x32xf32>
    %91 = vector.extract_strided_slice %90 {offsets = [0, 0], sizes = [16, 16], strides = [1, 1]} : vector<16x32xf32> to vector<16x16xf32>
    %92 = vector.extract_strided_slice %90 {offsets = [0, 16], sizes = [16, 16], strides = [1, 1]} : vector<16x32xf32> to vector<16x16xf32>
    %c1_i32_29 = arith.constant 1 : i32
    %93 = tpu.dynamic_rotate %92 by %c1_i32_29 dim 0 : vector<16x16xf32>, i32 -> vector<16x16xf32>
    %c0_i32_30 = arith.constant 0 : i32
    %94 = vector.broadcast %c0_i32_30 : i32 to vector<16x1xi32>
    %95 = arith.cmpi ne, %2, %94 : vector<16x1xi32>
    %cst_31 = arith.constant 0.000000e+00 : f32
    %96 = vector.shape_cast %95 : vector<16x1xi1> to vector<16x1xi1>
    %97 = vector.broadcast %96 : vector<16x1xi1> to vector<16x16xi1>
    %98 = vector.broadcast %cst_31 : f32 to vector<16x16xf32>
    %99 = arith.select %97, %93, %98 : vector<16x16xi1>, vector<16x16xf32>
    %c15_i32_32 = arith.constant 15 : i32
    %100 = tpu.dynamic_rotate %91 by %c15_i32_32 dim 0 : vector<16x16xf32>, i32 -> vector<16x16xf32>
    %c7_i32_33 = arith.constant 7 : i32
    %101 = vector.broadcast %c7_i32_33 : i32 to vector<16x1xi32>
    %102 = arith.cmpi ne, %2, %101 : vector<16x1xi32>
    %cst_34 = arith.constant 0.000000e+00 : f32
    %103 = vector.shape_cast %102 : vector<16x1xi1> to vector<16x1xi1>
    %104 = vector.broadcast %103 : vector<16x1xi1> to vector<16x16xi1>
    %105 = vector.broadcast %cst_34 : f32 to vector<16x16xf32>
    %106 = arith.select %104, %100, %105 : vector<16x16xi1>, vector<16x16xf32>
    %107 = tpu.concatenate %99, %91, %92, %106 in 1 : vector<16x16xf32>, vector<16x16xf32>, vector<16x16xf32>, vector<16x16xf32> -> vector<16x64xf32>
    %108 = arith.truncf %107 : vector<16x64xf32> to vector<16x64xbf16>
    %c0_35 = arith.constant 0 : index
    %c0_36 = arith.constant 0 : index
    %109 = vector.load %arg7[%c0_35, %c0_36] : memref<64x128xbf16, #tpu.memory_space<vmem>>, vector<64x128xbf16>
    %cst_37 = arith.constant dense<0.000000e+00> : vector<16x128xf32>
    %110 = tpu.matmul %108, %109, %cst_37 {dimension_numbers = #tpu.dot_dimension_numbers<[1], [0], [0], [1], [0, 0, 1, 1], [], []>} : vector<16x64xbf16>, vector<64x128xbf16>, vector<16x128xf32> -> vector<16x128xf32>
    %c0_38 = arith.constant 0 : index
    %c0_39 = arith.constant 0 : index
    %111 = vector.load %arg8[%c0_38, %c0_39] : memref<1x128xf32, #tpu.memory_space<vmem>>, vector<1x128xf32>
    %112 = vector.broadcast %111 : vector<1x128xf32> to vector<16x128xf32>
    %113 = arith.addf %110, %112 : vector<16x128xf32>
    %c0_40 = arith.constant 0 : index
    %c0_41 = arith.constant 0 : index
    %114 = vector.load %arg9[%c0_40, %c0_41] : memref<16x128xf32, #tpu.memory_space<vmem>>, vector<16x128xf32>
    tpu.vector_store %arg9[%c0_40, %c0_41], %113 {strides = array<i32>} : memref<16x128xf32, #tpu.memory_space<vmem>>, vector<16x128xf32>,
    return
  }
  func.func @transform_0(%arg0: i32) -> (i32, i32, i32) {
    %c0_i32 = arith.constant 0 : i32
    %c0_i32_0 = arith.constant 0 : i32
    %c0_i32_1 = arith.constant 0 : i32
    return %arg0, %c0_i32, %c0_i32_0 : i32, i32, i32
  }
  func.func @transform_1(%arg0: i32) -> (i32, i32) {
    %c0_i32 = arith.constant 0 : i32
    %c0_i32_0 = arith.constant 0 : i32
    %c0_i32_1 = arith.constant 0 : i32
    return %c0_i32, %c0_i32_0 : i32, i32
  }
  func.func @transform_2(%arg0: i32) -> (i32, i32) {
    %c0_i32 = arith.constant 0 : i32
    %c0_i32_0 = arith.constant 0 : i32
    %c0_i32_1 = arith.constant 0 : i32
    return %c0_i32, %c0_i32_0 : i32, i32
  }
  func.func @transform_3(%arg0: i32) -> (i32, i32) {
    %c0_i32 = arith.constant 0 : i32
    %c0_i32_0 = arith.constant 0 : i32
    %c0_i32_1 = arith.constant 0 : i32
    return %c0_i32, %c0_i32_0 : i32, i32
  }
  func.func @transform_4(%arg0: i32) -> (i32, i32) {
    %c0_i32 = arith.constant 0 : i32
    %c0_i32_0 = arith.constant 0 : i32
    %c0_i32_1 = arith.constant 0 : i32
    return %c0_i32, %c0_i32_0 : i32, i32
  }
  func.func @transform_5(%arg0: i32) -> (i32, i32) {
    %c0_i32 = arith.constant 0 : i32
    %c0_i32_0 = arith.constant 0 : i32
    %c0_i32_1 = arith.constant 0 : i32
    return %c0_i32, %c0_i32_0 : i32, i32
  }
  func.func @transform_6(%arg0: i32) -> (i32, i32) {
    %c0_i32 = arith.constant 0 : i32
    %c0_i32_0 = arith.constant 0 : i32
    %c0_i32_1 = arith.constant 0 : i32
    return %c0_i32, %c0_i32_0 : i32, i32
  }
  func.func @transform_7(%arg0: i32) -> (i32, i32) {
    %c0_i32 = arith.constant 0 : i32
    %c0_i32_0 = arith.constant 0 : i32
    %c0_i32_1 = arith.constant 0 : i32
    return %c0_i32, %c0_i32_0 : i32, i32
  }
  func.func @transform_8(%arg0: i32) -> (i32, i32) {
    %c0_i32 = arith.constant 0 : i32
    %c0_i32_0 = arith.constant 0 : i32
    return %arg0, %c0_i32 : i32, i32
  }
}

</mosaic_0001>

<bundles_post_ra>
// kernel: compression_decode.1
= control target key start
LH: loop header
LB: loop body
LE: loop exit
PB: predicated region body
PF: predicated region fallthrough
CT: control target
= control target key end

     0   :  { %v939_v0 = vmov 3   ;;  %v940_v1 = vmov 1   ;;  %v941_v4 = vmov 0.0   ;;  %v942_v5 = vmov 2   ;;  %s947_s26 = smov 16   ;;  %s948_s27 = smov 112   ;;  %s1233_s0 = inlined_call_operand.vmem [shape: s32[2,8,4], index: 0, kind: input, shape index: {}]   ;;  %s1234_s1 = inlined_call_operand.vmem [shape: bf16[256,32], index: 1, kind: input, shape index: {}]   ;;  %s1235_s2 = inlined_call_operand.vmem [shape: bf16[96,32], index: 2, kind: input, shape index: {}]   ;;  %s1236_s4 = inlined_call_operand.vmem [shape: bf16[96,32], index: 4, kind: input, shape index: {}]   ;;  %s1237_s3 = inlined_call_operand.vmem [shape: f32[1,32], index: 3, kind: input, shape index: {}]   ;;  %s1238_s6 = inlined_call_operand.vmem [shape: bf16[64,128], index: 6, kind: input, shape index: {}]   ;;  %s1239_s5 = inlined_call_operand.vmem [shape: f32[1,32], index: 5, kind: input, shape index: {}]   ;;  %s1240_s7 = inlined_call_operand.vmem [shape: f32[1,128], index: 7, kind: input, shape index: {}]   ;;  %s1241_s8 = inlined_call_operand.vmem [shape: f32[16,128], index: 8, kind: output, shape index: {}]  }
   0x1   :  { %857 = vset.pattern.permute.xlu0 %v939_v0  ;;  %858 = vset.pattern.permute.xlu1 %v940_v1  ;;  %v35_v2 = vld [vmem:[%s1233_s0] sm:$0xff]  ;;  %v36_v3 = vld [vmem:[%s1233_s0 + $0x8] sm:$0xff]  ;;  %v943_v6 = vmov 0   ;;  %v903_v11 = vld [vmem:[%s1234_s1 + $0x50] sm:$0xff]   ;;  %v30_v21 = vlaneseq  ;;  %vm97_vm8 = vcmask 523264   ;;  %vm945_vm9 = vmmov 0  }
   0x2   :  { %53 = vperm.xlu1 %858, %v35_v2   ;;  %79 = vperm.xlu0 %857, %v35_v2   ;;  %v899_v7 = vld [vmem:[%s1234_s1 + $0x40] sm:$0xff]   ;;  %v901_v9 = vld [vmem:[%s1234_s1 + $0x48] sm:$0xff]   ;;  %v904_v12 = vld [vmem:[%s1234_s1 + $0x10] sm:$0xff]  }
   0x3   :  { %802 = vmatprep.subr.bf16.mxu1 %v941_v4  ;;  %v900_v8 = vld [vmem:[%s1234_s1] sm:$0xff]   ;;  %761 = vmatprep.subr.bf16.mxu0 %v899_v7  ;;  %v902_v10 = vld [vmem:[%s1234_s1 + $0x8] sm:$0xff]   ;;  %v905_v13 = vld [vmem:[%s1234_s1 + $0x58] sm:$0xff]   ;;  %v38_v24 = vand.u32 127, %v30_v21  ;;  %v1079_v53 = vshrl.u32 %v30_v21, 7 }
   0x4   :  { %762 = vmatpush3.bf16.msra.mxu0 %v900_v8  ;;  %v906_v14 = vld [vmem:[%s1234_s1 + $0x18] sm:$0xff]   ;;  %v907_v15 = vld [vmem:[%s1234_s1 + $0x60] sm:$0xff]   ;;  %v909_v17 = vld [vmem:[%s1234_s1 + $0x68] sm:$0xff]   ;;  %814 = vmatprep.mubr.msk.bf16.mxu1 %vm945_vm9, %v941_v4 }
   0x5   :  { %763 = vmatprep.subr.bf16.mxu0 %v901_v9  ;;  %v908_v16 = vld [vmem:[%s1234_s1 + $0x20] sm:$0xff]   ;;  %v910_v18 = vld [vmem:[%s1234_s1 + $0x28] sm:$0xff]   ;;  %v911_v19 = vld [vmem:[%s1234_s1 + $0x70] sm:$0xff]   ;;  %v32_v55 = vadd.s32 8, %v1079_v53  ;;  %v33_v59 = vand.u32 7, %v1079_v53  ;;  %vm290_vm10 = vcmp.lt.s32.totalorder %v1079_v53, 7 }
   0x6   :  { %56 = vperm.xlu1 %858, %v36_v3   ;;  %82 = vperm.xlu0 %857, %v36_v3   ;;  %v912_v20 = vld [vmem:[%s1234_s1 + $0x30] sm:$0xff]   ;;  %v913_v22 = vld [vmem:[%s1234_s1 + $0x78] sm:$0xff]   ;;  %v915_v49 = vld [vmem:[%s1235_s2] sm:$0xff]   ;;  %vm277_vm13 = vcmp.lt.s32.totalorder %v1079_v53, 1 }
   0x7   :  { %v914_v23 = vld [vmem:[%s1234_s1 + $0x38] sm:$0xff]   ;;  %s944_s1 = smov 64   ;;  %803 = vmatpush3.bf16.msra.mxu1 %v915_v49  ;;  %v916_v50 = vld [vmem:[%s1235_s2 + $0x8] sm:$0xff]   ;;  %v917_v51 = vld [vmem:[%s1235_s2 + $0x10] sm:$0xff]   ;;  %v34_v60 = vand.u32 7, %v32_v55  ;;  %vm1096_vm11 = vcmp.ne.s32.totalorder %v33_v59, 7 }
   0x8   :  { %764 = vmatpush3.bf16.msra.mxu0 %v902_v10  ;;  %804 = vmatprep.subr.bf16.mxu1 %v941_v4  ;;  %v918_v52 = vld [vmem:[%s1235_s2 + $0x18] sm:$0xff]   ;;  %v919_v54 = vld [vmem:[%s1235_s2 + $0x20] sm:$0xff]   ;;  %v920_v56 = vld [vmem:[%s1235_s2 + $0x28] sm:$0xff]   ;;  %s946_s2 = smov 32   ;;  %vm1119_vm14 = vcmp.ne.s32.totalorder %v33_v59, 0 }
   0x9   :  { %765 = vmatprep.subr.bf16.mxu0 %v903_v11  ;;  %vm1100_vm12 = vcmp.ne.s32.totalorder %v34_v60, 7  ;;  %vm1123_vm15 = vcmp.ne.s32.totalorder %v34_v60, 0  ;;  %v755_v53 = vld [vmem:[%s1240_s7] ss:$0 sm:$0xff] }
   0xa   :  { %860 = vset.pattern.permute.xlu1 %v942_v5  ;;  %859 = vset.pattern.permute.xlu0 %v942_v5 }
   0xb   :  { %69 = vperm.xlu1 %860, %v36_v3   ;;  %66 = vperm.xlu0 %859, %v35_v2  }
   0xc   :  { %766 = vmatpush3.bf16.msra.mxu0 %v904_v12  ;;  %805 = vmatpush3.bf16.msra.mxu1 %v916_v50 }
   0xd   :  { %767 = vmatprep.subr.bf16.mxu0 %v905_v13  ;;  %806 = vmatprep.subr.bf16.mxu1 %v941_v4 }
   0xf   :  { %861 = vset.pattern.permute.xlu1 %v943_v6  ;;  %862 = vset.pattern.permute.xlu0 %v943_v6 }
  0x10   :  { %40 = vperm.xlu1 %861, %v35_v2   ;;  %43 = vperm.xlu0 %862, %v36_v3  }
  0x11   :  { %768 = vmatpush3.bf16.msra.mxu0 %v906_v14  ;;  %807 = vmatpush3.bf16.msra.mxu1 %v917_v51 }
  0x12   :  { %769 = vmatprep.subr.bf16.mxu0 %v907_v15  ;;  %808 = vmatprep.subr.bf16.mxu1 %v941_v4 }
  0x14   :  { %898 = vset.pattern.permute.xlu0 %v939_v0 }
  0x15   :  { %770 = vmatpush3.bf16.msra.mxu0 %v908_v16  ;;  %809 = vmatpush3.bf16.msra.mxu1 %v918_v52 }
  0x16   :  { %771 = vmatprep.subr.bf16.mxu0 %v909_v17  ;;  %810 = vmatprep.subr.bf16.mxu1 %v941_v4 }
  0x19   :  { %772 = vmatpush3.bf16.msra.mxu0 %v910_v18  ;;  %811 = vmatpush3.bf16.msra.mxu1 %v919_v54 }
  0x1a   :  { %773 = vmatprep.subr.bf16.mxu0 %v911_v19  ;;  %812 = vmatprep.subr.bf16.mxu1 %v941_v4 }
  0x1d   :  { %774 = vmatpush3.bf16.msra.mxu0 %v912_v20  ;;  %813 = vmatpush3.bf16.msra.mxu1 %v920_v56 }
  0x1e   :  { %775 = vmatprep.subr.bf16.mxu0 %v913_v22  ;;  %818 = vmatprep.subr.bf16.mxu1 %v941_v4 }
  0x21   :  { %776 = vmatpush3.bf16.msra.mxu0 %v914_v23 }
  0x22   :  { %834 = vmatprep.subr.bf16.mxu0 %v941_v4 }
  0x81   :  { %v54_v25 = vpop.permute.xlu1 %53  ;;  %v80_v26 = vpop.permute.xlu0 %79 }
  0x82   :  { %vm84_vm0 = vcmp.eq.s32.totalorder %v80_v26, %v38_v24  ;;  %vm58_vm1 = vcmp.eq.s32.totalorder %v54_v25, %v38_v24 }
  0x83   :  { %v717_v29 = vsel %vm84_vm0, 1.0, %v941_v4  ;;  %v713_v32 = vsel %vm58_vm1, 1.0, %v941_v4  ;;  %vm317_vm0 = vcmask 261120   ;;  %vm378_vm1 = vcmask 785408  }
  0x85   :  { %v57_v27 = vpop.permute.xlu1 %56  ;;  %v83_v28 = vpop.permute.xlu0 %82 }
  0x86   :  { %vm59_vm2 = vcmp.eq.s32.totalorder %v57_v27, %v38_v24  ;;  %vm85_vm3 = vcmp.eq.s32.totalorder %v83_v28, %v38_v24 }
  0x87   :  { %v718_v30 = vsel %vm85_vm3, 1.0, %v941_v4  ;;  %v714_v33 = vsel %vm59_vm2, 1.0, %v941_v4 }
  0x88   :  { %v90_v31 = vpack.c.bf16 %v718_v30, %v717_v29  ;;  %v64_v34 = vpack.c.bf16 %v714_v33, %v713_v32  ;;  %v922_v32 = vld [vmem:[%s1236_s4 + $0x8] sm:$0xff]   ;;  %v923_v33 = vld [vmem:[%s1236_s4 + $0x10] sm:$0xff]  }
  0x8a   :  { %95 = vrot.lane.b32.xlu1 %v90_v31, %s944_s1  ;;  %v70_v35 = vpop.permute.xlu1 %69  ;;  %v67_v36 = vpop.permute.xlu0 %66  ;;  %v921_v31 = vld [vmem:[%s1236_s4] sm:$0xff]  }
  0x8b   :  { %vm72_vm4 = vcmp.eq.s32.totalorder %v70_v35, %v38_v24  ;;  %vm71_vm5 = vcmp.eq.s32.totalorder %v67_v36, %v38_v24  ;;  %v925_v35 = vld [vmem:[%s1236_s4 + $0x20] sm:$0xff]  }
  0x8c   :  { %v716_v39 = vsel %vm72_vm4, 1.0, %v941_v4  ;;  %v715_v40 = vsel %vm71_vm5, 1.0, %v941_v4  ;;  %v735_v36 = vld [vmem:[%s1237_s3] ss:$0 sm:$0xff] }
  0x8d   :  { %v77_v41 = vpack.c.bf16 %v716_v39, %v715_v40 }
  0x8e   :  { %92 = vrot.lane.b32.xlu1 %v64_v34, %s944_s1  ;;  %v924_v34 = vld [vmem:[%s1236_s4 + $0x18] sm:$0xff]  }
  0x8f   :  { %v41_v37 = vpop.permute.xlu1 %40  ;;  %v44_v38 = vpop.permute.xlu0 %43 }
  0x90   :  { %vm45_vm6 = vcmp.eq.s32.totalorder %v41_v37, %v38_v24  ;;  %vm46_vm7 = vcmp.eq.s32.totalorder %v44_v38, %v38_v24 }
  0x91   :  { %v711_v42 = vsel %vm45_vm6, 1.0, %v941_v4  ;;  %v712_v43 = vsel %vm46_vm7, 1.0, %v941_v4  ;;  %vm613_vm6 = vcmask 130048   ;;  %vm618_vm7 = vcmask 392192  }
  0x92   :  { %v51_v46 = vpack.c.bf16 %v712_v43, %v711_v42 }
  0xfc   :  { %v96_v44 = vpop.permute.xlu1 %95 }
  0xfd   :  { %v104_v45 = vsel %vm97_vm8, %v77_v41, %v96_v44 }
  0xfe   :  { %266 = vmatprep.mubr.bf16.mxu0 %v104_v45 }
 0x100   :  { %v93_v47 = vpop.permute.xlu1 %92 }
 0x101   :  { %v100_v48 = vsel %vm97_vm8, %v51_v46, %v93_v47 }
 0x102   :  { %267 = vmatmul.mubr.bf16.vlgmr.msra.gmra.mrb[0].mxu0 %v100_v48  ;;  %v926_v48 = vld [vmem:[%s1236_s4 + $0x28] sm:$0xff]  }
 0x103   :  { %842 = vmatprep.mubr.msk.bf16.mxu0 %vm945_vm9, %v941_v4 }
 0x1d5   :  { %v777_v57 = vpop.f32.mrb[0].mxu0 }
 0x1d6   :  { %v778_v58 = vpop.f32.mrb[1].mxu0 }
 0x1d7   :  { %v779_v61 = vadd.f32 %v778_v58, %v777_v57  ;;  %v780_v62 = vpop.f32.mrb[2].mxu0 }
 0x1d8   :  { %v781_v63 = vpop.f32.mrb[3].mxu0 }
 0x1d9   :  { %v782_v0 = vadd.f32 %v781_v63, %v780_v62  ;;  %v275_v1 = vrot.slane %v779_v61, 7  ;;  %v288_v5 = vrot.slane %v779_v61, 1 }
 0x1db   :  { %v276_v6 = vrot.slane %v782_v0, 7  ;;  %v289_v7 = vrot.slane %v782_v0, 1  ;;  %v863_v8 = vpack.i.bf16 %v782_v0, %v779_v61 }
 0x1dd   :  { %864 = vrot.lane.b32.xlu0 %v863_v8, %s946_s2  ;;  %v291_v9 = vsel %vm290_vm10, %v288_v5, %v289_v7  ;;  %v292_v10 = vsel %vm290_vm10, %v289_v7, %v288_v5  ;;  %v278_v11 = vsel %vm277_vm13, %v275_v1, %v276_v6  ;;  %v279_v12 = vsel %vm277_vm13, %v276_v6, %v275_v1 }
 0x1de   :  { %v299_v13 = vsel %vm1096_vm11, %v291_v9, 0.0  ;;  %v300_v14 = vsel %vm1100_vm12, %v292_v10, 0.0  ;;  %v286_v22 = vsel %vm1119_vm14, %v279_v12, 0.0  ;;  %v287_v23 = vsel %vm1123_vm15, %v278_v11, 0.0 }
 0x1df   :  { %v868_v15 = vpack.i.bf16 %v300_v14, %v299_v13 }
 0x1e1   :  { %869 = vrot.lane.b32.xlu1 %v868_v15, %s944_s1 }
 0x24f   :  { %v865_v16 = vpop.permute.xlu0 %864 }
 0x250   :  { %v867_v19 = vunpack.i.h.bf16 %v865_v16  ;;  %v866_v20 = vunpack.i.l.bf16 %v865_v16 }
 0x252   :  { %v318_v26 = vsel %vm317_vm0, %v286_v22, %v866_v20  ;;  %v319_v27 = vsel %vm317_vm0, %v287_v23, %v867_v19  ;;  %v745_v22 = vld [vmem:[%s1239_s5] ss:$0 sm:$0xff] }
 0x253   :  { %v870_v21 = vpop.permute.xlu1 %869 }
 0x254   :  { %v872_v24 = vunpack.i.h.bf16 %v870_v21  ;;  %v871_v25 = vunpack.i.l.bf16 %v870_v21  ;;  %v927_v21 = vld [vmem:[%s1238_s6] sm:$0xff]  }
 0x255   :  { %835 = vmatpush3.bf16.msra.mxu0 %v927_v21 }
 0x256   :  { %v320_v28 = vsel %vm97_vm8, %v318_v26, %v871_v25  ;;  %v321_v29 = vsel %vm97_vm8, %v319_v27, %v872_v24  ;;  %836 = vmatprep.subr.bf16.mxu0 %v941_v4 }
 0x257   :  { %v322_v30 = vpack.c.bf16 %v321_v29, %v320_v28 }
 0x259   :  { %815 = vmatmul.mubr.msk.bf16.vlgmr.msra.gmra.mrb[0].mxu1 %vm378_vm1, %v322_v30 }
 0x25a   :  { %830 = vmatprep.mubr.msk.bf16.mxu1 %vm945_vm9, %v941_v4  ;;  %819 = vmatpush3.bf16.msra.mxu1 %v921_v31 }
 0x25b   :  { %820 = vmatprep.subr.bf16.mxu1 %v941_v4 }
 0x25e   :  { %821 = vmatpush3.bf16.msra.mxu1 %v922_v32 }
 0x25f   :  { %822 = vmatprep.subr.bf16.mxu1 %v941_v4 }
 0x262   :  { %823 = vmatpush3.bf16.msra.mxu1 %v923_v33  ;;  %v928_v33 = vld [vmem:[%s1238_s6 + $0x8] sm:$0xff]  }
 0x263   :  { %824 = vmatprep.subr.bf16.mxu1 %v941_v4  ;;  %837 = vmatpush3.bf16.msra.mxu0 %v928_v33 }
 0x264   :  { %838 = vmatprep.subr.bf16.mxu0 %v941_v4 }
 0x266   :  { %825 = vmatpush3.bf16.msra.mxu1 %v924_v34  ;;  %v929_v34 = vld [vmem:[%s1238_s6 + $0x10] sm:$0xff]  }
 0x267   :  { %826 = vmatprep.subr.bf16.mxu1 %v941_v4  ;;  %839 = vmatpush3.bf16.msra.mxu0 %v929_v34 }
 0x268   :  { %840 = vmatprep.subr.bf16.mxu0 %v941_v4 }
 0x26a   :  { %827 = vmatpush3.bf16.msra.mxu1 %v925_v35 }
 0x26b   :  { %828 = vmatprep.subr.bf16.mxu1 %v941_v4 }
 0x26e   :  { %829 = vmatpush3.bf16.msra.mxu1 %v926_v48 }
 0x32c   :  { %v416_v37 = vpop.f32.mrb[0].mxu1 }
 0x32d   :  { %v417_v38 = vadd.f32 %v735_v36, %v416_v37  ;;  %v816_v39 = vpop.f32.mrb[1].mxu1  ;;  %v930_v37 = vld [vmem:[%s1238_s6 + $0x18] sm:$0xff]   ;;  %s949_s6 = smov 48  }
 0x32e   :  { %v419_v40 = vpop.f32.mrb[2].mxu1  ;;  %841 = vmatpush3.bf16.msra.mxu0 %v930_v37 }
 0x32f   :  { %v425_v41 = vmin.f32 %v417_v38, 0.0  ;;  %v420_v42 = vadd.f32 %v735_v36, %v419_v40  ;;  %v817_v43 = vpop.f32.mrb[3].mxu1  ;;  %vm423_vm2 = vcmp.gt.f32.partialorder %v417_v38, 0.0 }
 0x331   :  { %v427_v44 = vmul.f32 1.442695, %v425_v41  ;;  %v426_v45 = vmin.f32 %v420_v42, 0.0  ;;  %vm424_vm3 = vcmp.gt.f32.partialorder %v420_v42, 0.0 }
 0x333   :  { %931 = vpow2.f32 %v427_v44  ;;  %v429_v46 = vmul.f32 1.442695, %v426_v45 }
 0x335   :  { %933 = vpow2.f32 %v429_v46 }
 0x33d   :  { %v932_v47 = vpop.eup %931 }
 0x33e   :  { %v743_v49 = vadd.f32 -1.0, %v932_v47 }
 0x33f   :  { %v934_v50 = vpop.eup %933 }
 0x340   :  { %v433_v51 = vsel %vm423_vm2, %v417_v38, %v743_v49  ;;  %v744_v52 = vadd.f32 -1.0, %v934_v50 }
 0x341   :  { %v435_v55 = vrot.slane %v433_v51, 7  ;;  %v441_v56 = vrot.slane %v433_v51, 1 }
 0x342   :  { %v434_v54 = vsel %vm424_vm3, %v420_v42, %v744_v52 }
 0x343   :  { %v436_v57 = vrot.slane %v434_v54, 7  ;;  %v442_v58 = vrot.slane %v434_v54, 1 }
 0x345   :  { %v443_v59 = vsel %vm290_vm10, %v441_v56, %v442_v58  ;;  %v444_v60 = vsel %vm290_vm10, %v442_v58, %v441_v56  ;;  %v437_v61 = vsel %vm277_vm13, %v435_v55, %v436_v57  ;;  %v438_v62 = vsel %vm277_vm13, %v436_v57, %v435_v55 }
 0x346   :  { %v445_v63 = vsel %vm1096_vm11, %v443_v59, 0.0  ;;  %v446_v0 = vsel %vm1100_vm12, %v444_v60, 0.0  ;;  %v439_v1 = vsel %vm1119_vm14, %v438_v62, 0.0  ;;  %v440_v5 = vsel %vm1123_vm15, %v437_v61, 0.0 }
 0x347   :  { %v878_v6 = vpack.i.bf16 %v446_v0, %v445_v63  ;;  %v873_v7 = vpack.i.bf16 %v440_v5, %v439_v1 }
 0x349   :  { %879 = vrot.lane.b32.xlu1 %v878_v6, %s944_s1  ;;  %874 = vrot.lane.b32.xlu0 %v873_v7, %s946_s2 }
 0x3bb   :  { %v880_v8 = vpop.permute.xlu1 %879  ;;  %v875_v9 = vpop.permute.xlu0 %874 }
 0x3bc   :  { %v882_v10 = vunpack.i.h.bf16 %v880_v8  ;;  %v881_v11 = vunpack.i.l.bf16 %v880_v8  ;;  %v877_v12 = vunpack.i.h.bf16 %v875_v9  ;;  %v876_v13 = vunpack.i.l.bf16 %v875_v9 }
 0x3be   :  { %v464_v14 = vsel %vm317_vm0, %v434_v54, %v877_v12  ;;  %v463_v15 = vsel %vm317_vm0, %v433_v51, %v876_v13 }
 0x3bf   :  { %v466_v16 = vsel %vm97_vm8, %v464_v14, %v882_v10  ;;  %v465_v19 = vsel %vm97_vm8, %v463_v15, %v881_v11 }
 0x3c0   :  { %v467_v20 = vpack.c.bf16 %v466_v16, %v465_v19 }
 0x3c2   :  { %831 = vmatmul.mubr.msk.bf16.vlgmr.msra.gmra.mrb[4].mxu1 %vm378_vm1, %v467_v20 }
 0x495   :  { %v560_v23 = vpop.f32.mrb[4].mxu1 }
 0x496   :  { %v561_v24 = vadd.f32 %v745_v22, %v560_v23  ;;  %v832_v25 = vpop.f32.mrb[5].mxu1 }
 0x497   :  { %v563_v26 = vpop.f32.mrb[6].mxu1 }
 0x498   :  { %v569_v27 = vmin.f32 %v561_v24, 0.0  ;;  %v564_v28 = vadd.f32 %v745_v22, %v563_v26  ;;  %v833_v29 = vpop.f32.mrb[7].mxu1  ;;  %vm567_vm4 = vcmp.gt.f32.partialorder %v561_v24, 0.0 }
 0x49a   :  { %v571_v30 = vmul.f32 1.442695, %v569_v27  ;;  %v570_v31 = vmin.f32 %v564_v28, 0.0  ;;  %vm568_vm5 = vcmp.gt.f32.partialorder %v564_v28, 0.0 }
 0x49c   :  { %935 = vpow2.f32 %v571_v30  ;;  %v573_v32 = vmul.f32 1.442695, %v570_v31 }
 0x49e   :  { %937 = vpow2.f32 %v573_v32 }
 0x4a6   :  { %v936_v35 = vpop.eup %935 }
 0x4a7   :  { %v753_v36 = vadd.f32 -1.0, %v936_v35 }
 0x4a8   :  { %v938_v38 = vpop.eup %937 }
 0x4a9   :  { %v577_v39 = vsel %vm567_vm4, %v561_v24, %v753_v36  ;;  %v754_v40 = vadd.f32 -1.0, %v938_v38 }
 0x4aa   :  { %v593_v42 = vrot.slane %v577_v39, 1 }
 0x4ab   :  { %v578_v41 = vsel %vm568_vm5, %v564_v28, %v754_v40 }
 0x4ac   :  { %v594_v43 = vrot.slane %v578_v41, 1  ;;  %v888_v44 = vpack.i.bf16 %v578_v41, %v577_v39 }
 0x4ae   :  { %889 = vrot.lane.b32.xlu1 %v888_v44, %s947_s26  ;;  %884 = vrot.lane.b32.xlu0 %v888_v44, %s948_s27  ;;  %v595_v4 = vsel %vm290_vm10, %v593_v42, %v594_v43  ;;  %v596_v45 = vsel %vm290_vm10, %v594_v43, %v593_v42 }
 0x4af   :  { %v597_v46 = vsel %vm1096_vm11, %v595_v4, 0.0  ;;  %v598_v47 = vsel %vm1100_vm12, %v596_v45, 0.0 }
 0x4b0   :  { %v893_v48 = vpack.i.bf16 %v598_v47, %v597_v46 }
 0x4b2   :  { %894 = vrot.lane.b32.xlu0 %v893_v48, %s949_s6 }
 0x520   :  { %v885_v49 = vpop.permute.xlu0 %884  ;;  %v890_v52 = vpop.permute.xlu1 %889 }
 0x521   :  { %v887_v50 = vunpack.i.h.bf16 %v885_v49  ;;  %v886_v51 = vunpack.i.l.bf16 %v885_v49  ;;  %v892_v57 = vunpack.i.h.bf16 %v890_v52  ;;  %v891_v58 = vunpack.i.l.bf16 %v890_v52 }
 0x523   :  { %v588_v54 = vrot.slane %v887_v50, 7  ;;  %v587_v55 = vrot.slane %v886_v51, 7 }
 0x524   :  { %v895_v56 = vpop.permute.xlu0 %894 }
 0x525   :  { %v589_v2 = vsel %vm277_vm13, %v587_v55, %v588_v54  ;;  %v590_v3 = vsel %vm277_vm13, %v588_v54, %v587_v55  ;;  %v897_v63 = vunpack.i.h.bf16 %v895_v56  ;;  %v896_v0 = vunpack.i.l.bf16 %v895_v56 }
 0x526   :  { %v591_v59 = vsel %vm1119_vm14, %v590_v3, 0.0  ;;  %v592_v60 = vsel %vm1123_vm15, %v589_v2, 0.0 }
 0x527   :  { %v614_v61 = vsel %vm613_vm6, %v591_v59, %v891_v58  ;;  %v615_v62 = vsel %vm613_vm6, %v592_v60, %v892_v57 }
 0x528   :  { %v616_v1 = vsel %vm317_vm0, %v614_v61, %v891_v58  ;;  %v617_v5 = vsel %vm317_vm0, %v615_v62, %v892_v57 }
 0x529   :  { %v620_v6 = vsel %vm618_vm7, %v617_v5, %v897_v63  ;;  %v619_v7 = vsel %vm618_vm7, %v616_v1, %v896_v0 }
 0x52a   :  { %v621_v8 = vpack.c.bf16 %v620_v6, %v619_v7 }
 0x52c   :  { %843 = vmatmul.mubr.msk.bf16.vlgmr.msra.gmra.mrb[4].mxu0 %vm97_vm8, %v621_v8 }
 0x5ff   :  { %v698_v17 = vpop.f32.mrb[4].mxu0 }
 0x600   :  { %v699_v18 = vadd.f32 %v755_v53, %v698_v17  ;;  %v844_v9 = vpop.f32.mrb[5].mxu0 }
 0x601   :  { %v701_v10 = vpop.f32.mrb[6].mxu0 }
 0x602   :  { %705 = vst [vmem:[%s1241_s8] sm:$0xff] %v699_v18  ;;  %v702_v11 = vadd.f32 %v755_v53, %v701_v10  ;;  %v845_v12 = vpop.f32.mrb[7].mxu0 }
 0x604   :  { %706 = vst [vmem:[%s1241_s8 + $0x8] sm:$0xff] %v702_v11 }

</bundles_post_ra>
